<compile_context>
chip_gen: v5e
topology: v5e:2x2
jax: 0.10.0
libtpu: 0.0.40
codegen_flags: <defaults>
</compile_context>

<pallas_src>
import functools

import jax
import jax.numpy as jnp
from jax.experimental import pallas as pl
from jax.experimental.pallas import tpu as pltpu

_HIDDEN = 128


# ----------------------------------------------------------------------------
# Device-aware defaults (computed once, outside jit)
# ----------------------------------------------------------------------------
def _tpu_kind():
    try:
        d = jax.devices()[0]
        if d.platform != "tpu":
            return ""
        return d.device_kind.lower()
    except Exception:  # pragma: no cover - defensive
        return ""


def _default_max_batch_tile():
    kind = _tpu_kind()
    # v6e / v7x: bigger tiles amortize the ~0.35us per-grid-step cost; their
    # 32 MiB scoped-VMEM defaults hold the ~15 MB double-buffered x stream.
    if ("v6" in kind) or ("v7" in kind) or ("7x" in kind):
        return 2048
    # v5e and older: stay inside the ~16 MiB scoped-VMEM default.
    return 1024


def _default_bf16_matmul():
    # v5e has no single-pass f32 MXU path: the f32 matmul per tile exceeds the
    # x-DMA time. An in-VMEM bf16 pack cast (HBM traffic unchanged, f32 accum)
    # restores the mem-bound roofline there. v6e/v7x: f32 is already hidden.
    kind = _tpu_kind()
    return ("v5 lite" in kind) or ("v5e" in kind) or ("v5lite" in kind)


def _choose_batch_tile(B, max_tb):
    """Pick a batch tile: >=2 balanced tiles (even count) once B is large enough."""
    if B < 256:
        return B  # single resident tile; pipelining overhead > any overlap win
    nb = max(2, -(-B // max_tb))        # at least 2 grid steps -> real pipelining
    if nb % 2:
        nb += 1                         # even tile count: both v7x TCs stay busy
    tb = -(-B // nb)                    # balanced split (avoid one tiny straggler)
    tb = -(-tb // 8) * 8                # sublane-align (required when TB < B)
    return min(tb, max_tb)


def _vmem_limit_bytes(TB, D, H, x_itemsize):
    d_pad = -(-D // 128) * 128
    h_pad = -(-H // 128) * 128
    est = (2 * TB * d_pad * x_itemsize      # double-buffered x stream
           + d_pad * h_pad * x_itemsize     # resident w1
           + 4 * h_pad * 4                  # b1 / w2 row / b2 (lane padded)
           + 2 * TB * 128 * 4)              # double-buffered (TB,1) output (lane pad)
    est = int(est * 1.5) + (2 << 20)        # headroom for compiler temporaries
    return max(min(est, 64 << 20), 16 << 20)


# ----------------------------------------------------------------------------
# Kernel
# ----------------------------------------------------------------------------
def _discriminator_kernel(x_ref, w1_ref, b1_ref, w2_ref, b2_ref, o_ref, *, bf16_matmul):
    """One batch tile: Linear -> (Dropout=id) -> LeakyReLU(0.1) -> Linear -> Sigmoid."""
    x = x_ref[...]
    w1 = w1_ref[...]
    if bf16_matmul:
        # In-VMEM VPU pack cast (v5e): HBM traffic unchanged, MXU pass ~4x cheaper,
        # accumulation stays f32 via preferred_element_type.
        x = x.astype(jnp.bfloat16)
        w1 = w1.astype(jnp.bfloat16)

    # Linear 1 on the MXU, f32 accumulation.
    h = jnp.dot(x, w1, preferred_element_type=jnp.float32)
    h = h + b1_ref[...]                                   # (TB, 128) + (1, 128)

    # LeakyReLU(negative_slope=0.1): single VPU max per vreg.
    h = jnp.maximum(h, 0.1 * h)

    # Linear 2 has N=1: VPU multiply + XLU lane reduction instead of a 1-column MXU pass.
    z = jnp.sum(h * w2_ref[...], axis=-1, keepdims=True) + b2_ref[...]   # (TB, 1)

    # Numerically stable sigmoid: exp + reciprocal both land on the EUP slot.
    e = jnp.exp(-jnp.abs(z))
    num = jnp.where(z >= 0.0, 1.0, e)
    o_ref[...] = (num * pl.reciprocal(1.0 + e, approx=True)).astype(o_ref.dtype)


# ----------------------------------------------------------------------------
# Wrapper
# ----------------------------------------------------------------------------
@functools.partial(jax.jit, static_argnames=("batch_tile", "bf16_matmul"))
def _forward_impl(x, w1, b1, w2, b2, *, batch_tile, bf16_matmul):
    B, D = x.shape
    H = w1.shape[1]
    TB = batch_tile
    NB = pl.cdiv(B, TB)

    # Weights are tiny and stay VMEM-resident; match x's dtype so a bf16-x caller
    # also streams bf16 weights. (Do NOT cast x here -- it is HBM-bound.)
    w1 = w1.astype(x.dtype)
    b1_2d = b1.reshape(1, H).astype(jnp.float32)
    w2_row = w2.reshape(1, H).astype(jnp.float32)
    b2_2d = b2.reshape(1, 1).astype(jnp.float32)

    kernel = functools.partial(_discriminator_kernel, bf16_matmul=bf16_matmul)

    cost = pl.CostEstimate(
        flops=2 * B * D * H + 6 * B * H,
        transcendentals=B,
        bytes_accessed=(B * D * x.dtype.itemsize
                        + D * H * w1.dtype.itemsize
                        + (3 * H + 1) * 4
                        + B * 4),
    )

    return pl.pallas_call(
        kernel,
        out_shape=jax.ShapeDtypeStruct((B, 1), jnp.float32),
        grid=(NB,),
        in_specs=[
            pl.BlockSpec((TB, D), lambda i: (i, 0)),   # x: streamed / double-buffered
            pl.BlockSpec((D, H), lambda i: (0, 0)),    # w1: resident
            pl.BlockSpec((1, H), lambda i: (0, 0)),    # b1: resident
            pl.BlockSpec((1, H), lambda i: (0, 0)),    # w2 row: resident
            pl.BlockSpec((1, 1), lambda i: (0, 0)),    # b2: resident
        ],
        out_specs=pl.BlockSpec((TB, 1), lambda i: (i, 0)),
        compiler_params=pltpu.CompilerParams(
            dimension_semantics=("parallel",),
            vmem_limit_bytes=_vmem_limit_bytes(TB, D, H, x.dtype.itemsize),
        ),
        cost_estimate=cost,
    )(x, w1, b1_2d, w2_row, b2_2d)


def discriminator_forward(x, w1, b1, w2, b2, *, batch_tile=None, bf16_matmul=None):
    """Eval-mode Discriminator forward.

    Args:
      x:  (B, img_dim) f32 (or bf16 -- only pass bf16 if the producer already
          emits bf16; adding a standalone wrapper cast would cost more HBM
          traffic than the kernel saves).
      w1: (img_dim, 128)  -- PyTorch weight (128, img_dim) pre-transposed to (in, out).
      b1: (128,)
      w2: (128, 1)        -- PyTorch weight (1, 128) pre-transposed to (in, out).
      b2: (1,)
      batch_tile: optional explicit batch-tile rows (must be a multiple of 8 when
          smaller than B). Default: device-aware auto selection.
      bf16_matmul: optional override for the in-kernel bf16 MXU cast
          (default: True on v5e, False elsewhere).
    Returns:
      (B, 1) f32 probabilities.
    """
    B = x.shape[0]
    if bf16_matmul is None:
        bf16_matmul = _default_bf16_matmul()
    if batch_tile is None:
        TB = _choose_batch_tile(B, _default_max_batch_tile())
    else:
        TB = min(int(batch_tile), B)
    return _forward_impl(x, w1, b1, w2, b2, batch_tile=TB, bf16_matmul=bool(bf16_matmul))


# ----------------------------------------------------------------------------
# Params / reference
# ----------------------------------------------------------------------------
def init_params(key, img_dim, hidden=_HIDDEN):
    """nn.Linear default init U(-1/sqrt(fan_in), 1/sqrt(fan_in)), stored as (in, out)."""
    k1, k2, k3, k4 = jax.random.split(key, 4)
    bound1 = 1.0 / jnp.sqrt(img_dim)
    bound2 = 1.0 / jnp.sqrt(hidden)
    w1 = jax.random.uniform(k1, (img_dim, hidden), jnp.float32, -bound1, bound1)
    b1 = jax.random.uniform(k2, (hidden,), jnp.float32, -bound1, bound1)
    w2 = jax.random.uniform(k3, (hidden, 1), jnp.float32, -bound2, bound2)
    b2 = jax.random.uniform(k4, (1,), jnp.float32, -bound2, bound2)
    return w1, b1, w2, b2


def _reference(x, w1, b1, w2, b2):
    h = x.astype(jnp.float32) @ w1 + b1
    h = jnp.where(h >= 0, h, 0.1 * h)
    return jax.nn.sigmoid(h @ w2 + b2)


if __name__ == "__main__":
    key = jax.random.PRNGKey(0)
    kx1, kx2, kx3, kp = jax.random.split(key, 4)

    img_dim = 784  # flattened 28x28 MNIST
    w1, b1, w2, b2 = init_params(kp, img_dim)

    # Tolerance: approx EUP reciprocal adds ~1e-4-level error; the v5e in-kernel
    # bf16 matmul path adds ~1e-2-level error (f32 accumulation, benign for a
    # sigmoid discriminator).
    tol = 2e-2 if _default_bf16_matmul() else 2e-3

    # 1) Small batch: single resident tile path.
    x_small = jax.random.normal(kx1, (8, img_dim), dtype=jnp.float32)
    out_small = jax.block_until_ready(discriminator_forward(x_small, w1, b1, w2, b2))
    ref_small = _reference(x_small, w1, b1, w2, b2)
    assert out_small.shape == (8, 1)
    assert jnp.allclose(out_small, ref_small, atol=tol, rtol=tol)

    # 2) Multi-tile grid path with a ragged last tile (B=40, tile=16 -> 3 grid steps).
    x_mid = jax.random.normal(kx2, (40, img_dim), dtype=jnp.float32)
    out_mid = jax.block_until_ready(
        discriminator_forward(x_mid, w1, b1, w2, b2, batch_tile=16)
    )
    ref_mid = _reference(x_mid, w1, b1, w2, b2)
    assert out_mid.shape == (40, 1)
    assert jnp.allclose(out_mid, ref_mid, atol=tol, rtol=tol)

    # 3) Auto tile selection: B=512 -> >=2 balanced tiles (even count), pipelined.
    x_big = jax.random.normal(kx3, (512, img_dim), dtype=jnp.float32)
    out_big = jax.block_until_ready(discriminator_forward(x_big, w1, b1, w2, b2))
    ref_big = _reference(x_big, w1, b1, w2, b2)
    assert out_big.shape == (512, 1)
    assert jnp.allclose(out_big, ref_big, atol=tol, rtol=tol)

    print("KERNEL_OK")
</pallas_src>

<mosaic_0001>
module attributes {stable_mosaic.version = 11 : i64} {
  func.func @_discriminator_kernel(%arg0: i32, %arg1: memref<8x784xf32, #tpu.memory_space<vmem>>, %arg2: memref<784x128xf32, #tpu.memory_space<vmem>>, %arg3: memref<1x128xf32, #tpu.memory_space<vmem>>, %arg4: memref<1x128xf32, #tpu.memory_space<vmem>>, %arg5: memref<1x1xf32, #tpu.memory_space<vmem>>, %arg6: memref<8x1xf32, #tpu.memory_space<vmem>>) attributes {dimension_semantics = [#tpu.dimension_semantics<parallel>], iteration_bounds = array<i64: 1>, scalar_prefetch = 0 : i64, scratch_operands = 0 : i64, tpu.core_type = #tpu.core_type<tc>, window_params = [{transform_indices = @transform_0, window_bounds = array<i64: 8, 784>}, {pipeline_mode = #tpu.pipeline_mode<synchronous>, transform_indices = @transform_1, window_bounds = array<i64: 784, 128>}, {pipeline_mode = #tpu.pipeline_mode<synchronous>, transform_indices = @transform_2, window_bounds = array<i64: 1, 128>}, {pipeline_mode = #tpu.pipeline_mode<synchronous>, transform_indices = @transform_3, window_bounds = array<i64: 1, 128>}, {pipeline_mode = #tpu.pipeline_mode<synchronous>, transform_indices = @transform_4, window_bounds = array<i64: 1, 1>}, {transform_indices = @transform_5, window_bounds = array<i64: 8, 1>}]} {
    %c0 = arith.constant 0 : index
    %c0_0 = arith.constant 0 : index
    %0 = vector.load %arg1[%c0, %c0_0] : memref<8x784xf32, #tpu.memory_space<vmem>>, vector<8x784xf32>
    %c0_1 = arith.constant 0 : index
    %c0_2 = arith.constant 0 : index
    %1 = vector.load %arg2[%c0_1, %c0_2] : memref<784x128xf32, #tpu.memory_space<vmem>>, vector<784x128xf32>
    %cst = arith.constant dense<0.000000e+00> : vector<8x128xf32>
    %2 = tpu.matmul %0, %1, %cst {dimension_numbers = #tpu.dot_dimension_numbers<[1], [0], [0], [1], [0, 0, 1, 1], [], []>} : vector<8x784xf32>, vector<784x128xf32>, vector<8x128xf32> -> vector<8x128xf32>
    %c0_3 = arith.constant 0 : index
    %c0_4 = arith.constant 0 : index
    %3 = vector.load %arg3[%c0_3, %c0_4] : memref<1x128xf32, #tpu.memory_space<vmem>>, vector<1x128xf32>
    %4 = vector.broadcast %3 : vector<1x128xf32> to vector<8x128xf32>
    %5 = arith.addf %2, %4 : vector<8x128xf32>
    %cst_5 = arith.constant 1.000000e-01 : f32
    %6 = vector.broadcast %cst_5 : f32 to vector<8x128xf32>
    %7 = arith.mulf %6, %5 : vector<8x128xf32>
    %8 = arith.maximumf %5, %7 : vector<8x128xf32>
    %c0_6 = arith.constant 0 : index
    %c0_7 = arith.constant 0 : index
    %9 = vector.load %arg4[%c0_6, %c0_7] : memref<1x128xf32, #tpu.memory_space<vmem>>, vector<1x128xf32>
    %10 = vector.broadcast %9 : vector<1x128xf32> to vector<8x128xf32>
    %11 = arith.mulf %8, %10 : vector<8x128xf32>
    %cst_8 = arith.constant dense<0.000000e+00> : vector<8xf32>
    %12 = vector.multi_reduction <add>, %11, %cst_8 [1] : vector<8x128xf32> to vector<8xf32>
    %13 = vector.shape_cast %12 : vector<8xf32> to vector<8x1xf32>
    %c0_9 = arith.constant 0 : index
    %c0_10 = arith.constant 0 : index
    %14 = vector.load %arg5[%c0_9, %c0_10] : memref<1x1xf32, #tpu.memory_space<vmem>>, vector<1x1xf32>
    %15 = vector.broadcast %14 : vector<1x1xf32> to vector<8x1xf32>
    %16 = arith.addf %13, %15 : vector<8x1xf32>
    %17 = math.absf %16 : vector<8x1xf32>
    %cst_11 = arith.constant 0.000000e+00 : f32
    %18 = vector.broadcast %cst_11 : f32 to vector<8x1xf32>
    %19 = arith.subf %18, %17 : vector<8x1xf32>
    %20 = math.exp %19 : vector<8x1xf32>
    %cst_12 = arith.constant 0.000000e+00 : f32
    %21 = vector.broadcast %cst_12 : f32 to vector<8x1xf32>
    %22 = arith.cmpf oge, %16, %21 : vector<8x1xf32>
    %cst_13 = arith.constant 1.000000e+00 : f32
    %23 = vector.broadcast %cst_13 : f32 to vector<8x1xf32>
    %24 = arith.select %22, %23, %20 : vector<8x1xi1>, vector<8x1xf32>
    %cst_14 = arith.constant 1.000000e+00 : f32
    %25 = vector.broadcast %cst_14 : f32 to vector<8x1xf32>
    %26 = arith.addf %25, %20 : vector<8x1xf32>
    %27 = tpu.reciprocal %26 {approx = true} : vector<8x1xf32> -> vector<8x1xf32>
    %28 = arith.mulf %24, %27 : vector<8x1xf32>
    %c0_15 = arith.constant 0 : index
    %c0_16 = arith.constant 0 : index
    %29 = vector.load %arg6[%c0_15, %c0_16] : memref<8x1xf32, #tpu.memory_space<vmem>>, vector<8x1xf32>
    tpu.vector_store %arg6[%c0_15, %c0_16], %28 {strides = array<i32>} : memref<8x1xf32, #tpu.memory_space<vmem>>, vector<8x1xf32>,
    return
  }
  func.func @transform_0(%arg0: i32) -> (i32, i32) {
    %c0_i32 = arith.constant 0 : i32
    %c0_i32_0 = arith.constant 0 : i32
    return %arg0, %c0_i32 : i32, i32
  }
  func.func @transform_1(%arg0: i32) -> (i32, i32) {
    %c0_i32 = arith.constant 0 : i32
    %c0_i32_0 = arith.constant 0 : i32
    %c0_i32_1 = arith.constant 0 : i32
    return %c0_i32, %c0_i32_0 : i32, i32
  }
  func.func @transform_2(%arg0: i32) -> (i32, i32) {
    %c0_i32 = arith.constant 0 : i32
    %c0_i32_0 = arith.constant 0 : i32
    %c0_i32_1 = arith.constant 0 : i32
    return %c0_i32, %c0_i32_0 : i32, i32
  }
  func.func @transform_3(%arg0: i32) -> (i32, i32) {
    %c0_i32 = arith.constant 0 : i32
    %c0_i32_0 = arith.constant 0 : i32
    %c0_i32_1 = arith.constant 0 : i32
    return %c0_i32, %c0_i32_0 : i32, i32
  }
  func.func @transform_4(%arg0: i32) -> (i32, i32) {
    %c0_i32 = arith.constant 0 : i32
    %c0_i32_0 = arith.constant 0 : i32
    %c0_i32_1 = arith.constant 0 : i32
    return %c0_i32, %c0_i32_0 : i32, i32
  }
  func.func @transform_5(%arg0: i32) -> (i32, i32) {
    %c0_i32 = arith.constant 0 : i32
    %c0_i32_0 = arith.constant 0 : i32
    return %arg0, %c0_i32 : i32, i32
  }
}

</mosaic_0001>

<bundles_post_ra>
// kernel: _forward_impl.1
= control target key start
LH: loop header
LB: loop body
LE: loop exit
PB: predicated region body
PF: predicated region fallthrough
CT: control target
= control target key end

     0   :  { %s452_s0 = inlined_call_operand.hbm [shape: f32[8,784], index: 0, kind: input, shape index: {}]   ;;  %s453_s1 = inlined_call_operand.hbm [shape: f32[784,128], index: 1, kind: input, shape index: {}]   ;;  %s454_s2 = inlined_call_operand.vmem [shape: f32[1,128], index: 2, kind: input, shape index: {}]   ;;  %s455_s3 = inlined_call_operand.vmem [shape: f32[1,128], index: 3, kind: input, shape index: {}]   ;;  %s456_s4 = inlined_call_operand.<no memory space> [shape: f32[1,1], index: 4, kind: input, shape index: {}]   ;;  %s457_s5 = inlined_call_operand.vmem [shape: f32[8,1], index: 5, kind: output, shape index: {}]  }
   0x1   :  { %v10_v0 = vstv %s456_s4 }
   0x2   :  { %11 = vst [vmem:[#allocation2] sm:$0x1] %v10_v0 }
   0x3   :  { %12 = vsyncpa [#allocation4], 0  ;;  %s19_s22 = sshll.u32 %s452_s0, 4  ;;  %s20_s22 = int_to_ptr.hbm [resolvable:$true] %s19_s22 }
   0x4   :  { %13 = vsyncpa [#allocation6], 0  ;;  %s400_s23 = smov [#allocation3]   ;;  %s29_s27 = sshll.u32 %s453_s1, 4  ;;  %s30_s27 = int_to_ptr.hbm [resolvable:$true] %s29_s27 }
   0x5   :  { %s21_s24 = sshll.u32 %s400_s23, 4  ;;  %s401_s28 = smov [#allocation5]   ;;  %s22_s24 = int_to_ptr.vmem [resolvable:$true] %s21_s24 }
   0x6   :  { %24 = dma.hbm_to_vmem [thread:$0]  %s20_s22, 896, %s22_s24, [#allocation4]  }
   0x7   :  { %s31_s29 = sshll.u32 %s401_s28, 4  ;;  %s402_s4 = smov 128   ;;  %s32_s29 = int_to_ptr.vmem [resolvable:$true] %s31_s29 }
   0x8   :  { %s403_s30 = smov 8  }
   0x9   :  { %37 = dma.hbm_to_vmem [thread:$0]  %s30_s27, 12544, %s32_s29, [#allocation6], %s402_s4, %s402_s4, %s403_s30  }
   0xa   :  { %396 = dma.done.wait [#allocation4], 896  }
   0xb   :  { %397 = vsyncadd [#allocation4], 4294966400 }
   0xc   :  { %398 = dma.done.wait [#allocation6], 12544  }
   0xd   :  { %399 = vsyncadd [#allocation6], 4294954752  ;;  %v74_v1 = vld [vmem:[#allocation5 + $0x78] sm:$0xff]  ;;  %v73_v2 = vld [vmem:[#allocation5 + $0x70] sm:$0xff]  ;;  %vm161_vm0 = vcmask 130048   ;;  %vm328_vm2 = vcmask 7168  }
   0xe   :  { %v90_v3 = vld [vmem:[#allocation5 + $0xf8] sm:$0xff]  ;;  %165 = vmatpush.msra.mxu0 %v74_v1  ;;  %v89_v4 = vld [vmem:[#allocation5 + $0xf0] sm:$0xff]  ;;  %v72_v5 = vld [vmem:[#allocation5 + $0x68] sm:$0xff] }
   0xf   :  { %185 = vmatpush.msra.mxu1 %v90_v3  ;;  %v88_v6 = vld [vmem:[#allocation5 + $0xe8] sm:$0xff]  ;;  %v71_v7 = vld [vmem:[#allocation5 + $0x60] sm:$0xff]  ;;  %v70_v9 = vld [vmem:[#allocation5 + $0x58] sm:$0xff] }
  0x10   :  { %166 = vmatpush.msra.mxu0 %v73_v2  ;;  %v87_v8 = vld [vmem:[#allocation5 + $0xe0] sm:$0xff]  ;;  %v86_v10 = vld [vmem:[#allocation5 + $0xd8] sm:$0xff]  ;;  %v69_v11 = vld [vmem:[#allocation5 + $0x50] sm:$0xff] }
  0x11   :  { %186 = vmatpush.msra.mxu1 %v89_v4  ;;  %v106_v12 = vld [vmem:[#allocation5 + $0x178] sm:$0xff]  ;;  %v85_v13 = vld [vmem:[#allocation5 + $0xd0] sm:$0xff]  ;;  %v104_v16 = vld [vmem:[#allocation5 + $0x168] sm:$0xff] }
  0x12   :  { %167 = vmatpush.msra.mxu0 %v72_v5  ;;  %205 = vmatpush.msra.mxu2 %v106_v12  ;;  %v105_v14 = vld [vmem:[#allocation5 + $0x170] sm:$0xff]  ;;  %v122_v15 = vld [vmem:[#allocation5 + $0x1f8] sm:$0xff]  ;;  %v68_v18 = vld [vmem:[#allocation5 + $0x48] sm:$0xff] }
  0x13   :  { %187 = vmatpush.msra.mxu1 %v88_v6  ;;  %v121_v17 = vld [vmem:[#allocation5 + $0x1f0] sm:$0xff]  ;;  %v84_v19 = vld [vmem:[#allocation5 + $0xc8] sm:$0xff]  ;;  %225 = vmatpush.msra.mxu3 %v122_v15  ;;  %v103_v20 = vld [vmem:[#allocation5 + $0x160] sm:$0xff] }
  0x14   :  { %168 = vmatpush.msra.mxu0 %v71_v7  ;;  %206 = vmatpush.msra.mxu2 %v105_v14  ;;  %v120_v21 = vld [vmem:[#allocation5 + $0x1e8] sm:$0xff]  ;;  %v67_v22 = vld [vmem:[#allocation5 + $0x40] sm:$0xff]  ;;  %v102_v24 = vld [vmem:[#allocation5 + $0x158] sm:$0xff] }
  0x15   :  { %188 = vmatpush.msra.mxu1 %v87_v8  ;;  %v83_v23 = vld [vmem:[#allocation5 + $0xc0] sm:$0xff]  ;;  %226 = vmatpush.msra.mxu3 %v121_v17  ;;  %v66_v26 = vld [vmem:[#allocation5 + $0x38] sm:$0xff]  ;;  %v101_v28 = vld [vmem:[#allocation5 + $0x150] sm:$0xff] }
  0x16   :  { %169 = vmatpush.msra.mxu0 %v70_v9  ;;  %207 = vmatpush.msra.mxu2 %v104_v16  ;;  %v119_v25 = vld [vmem:[#allocation5 + $0x1e0] sm:$0xff]  ;;  %v82_v27 = vld [vmem:[#allocation5 + $0xb8] sm:$0xff]  ;;  %v65_v30 = vld [vmem:[#allocation5 + $0x30] sm:$0xff] }
  0x17   :  { %189 = vmatpush.msra.mxu1 %v86_v10  ;;  %227 = vmatpush.msra.mxu3 %v120_v21  ;;  %v118_v29 = vld [vmem:[#allocation5 + $0x1d8] sm:$0xff]  ;;  %v81_v31 = vld [vmem:[#allocation5 + $0xb0] sm:$0xff]  ;;  %v100_v32 = vld [vmem:[#allocation5 + $0x148] sm:$0xff] }
  0x18   :  { %170 = vmatpush.msra.mxu0 %v69_v11  ;;  %208 = vmatpush.msra.mxu2 %v103_v20  ;;  %v117_v33 = vld [vmem:[#allocation5 + $0x1d0] sm:$0xff]  ;;  %v64_v34 = vld [vmem:[#allocation5 + $0x28] sm:$0xff]  ;;  %v99_v36 = vld [vmem:[#allocation5 + $0x140] sm:$0xff] }
  0x19   :  { %190 = vmatpush.msra.mxu1 %v85_v13  ;;  %228 = vmatpush.msra.mxu3 %v119_v25  ;;  %v80_v35 = vld [vmem:[#allocation5 + $0xa8] sm:$0xff]  ;;  %v63_v38 = vld [vmem:[#allocation5 + $0x20] sm:$0xff]  ;;  %v98_v40 = vld [vmem:[#allocation5 + $0x138] sm:$0xff] }
  0x1a   :  { %171 = vmatpush.msra.mxu0 %v68_v18  ;;  %209 = vmatpush.msra.mxu2 %v102_v24  ;;  %v116_v37 = vld [vmem:[#allocation5 + $0x1c8] sm:$0xff]  ;;  %v79_v39 = vld [vmem:[#allocation5 + $0xa0] sm:$0xff]  ;;  %v62_v42 = vld [vmem:[#allocation5 + $0x18] sm:$0xff] }
  0x1b   :  { %191 = vmatpush.msra.mxu1 %v84_v19  ;;  %229 = vmatpush.msra.mxu3 %v118_v29  ;;  %v115_v41 = vld [vmem:[#allocation5 + $0x1c0] sm:$0xff]  ;;  %v78_v43 = vld [vmem:[#allocation5 + $0x98] sm:$0xff]  ;;  %v97_v44 = vld [vmem:[#allocation5 + $0x130] sm:$0xff] }
  0x1c   :  { %172 = vmatpush.msra.mxu0 %v67_v22  ;;  %210 = vmatpush.msra.mxu2 %v101_v28  ;;  %v114_v45 = vld [vmem:[#allocation5 + $0x1b8] sm:$0xff]  ;;  %v61_v46 = vld [vmem:[#allocation5 + $0x10] sm:$0xff]  ;;  %v96_v48 = vld [vmem:[#allocation5 + $0x128] sm:$0xff] }
  0x1d   :  { %192 = vmatpush.msra.mxu1 %v83_v23  ;;  %230 = vmatpush.msra.mxu3 %v117_v33  ;;  %v77_v47 = vld [vmem:[#allocation5 + $0x90] sm:$0xff]  ;;  %v60_v50 = vld [vmem:[#allocation5 + $0x8] sm:$0xff]  ;;  %v95_v52 = vld [vmem:[#allocation5 + $0x120] sm:$0xff] }
  0x1e   :  { %173 = vmatpush.msra.mxu0 %v66_v26  ;;  %211 = vmatpush.msra.mxu2 %v100_v32  ;;  %v113_v49 = vld [vmem:[#allocation5 + $0x1b0] sm:$0xff]  ;;  %v76_v51 = vld [vmem:[#allocation5 + $0x88] sm:$0xff]  ;;  %v59_v54 = vld [vmem:[#allocation5] sm:$0xff] }
  0x1f   :  { %193 = vmatpush.msra.mxu1 %v82_v27  ;;  %231 = vmatpush.msra.mxu3 %v116_v37  ;;  %v112_v53 = vld [vmem:[#allocation5 + $0x1a8] sm:$0xff]  ;;  %v75_v55 = vld [vmem:[#allocation5 + $0x80] sm:$0xff]  ;;  %v138_v56 = vld [vmem:[#allocation5 + $0x278] sm:$0xff] }
  0x20   :  { %174 = vmatpush.msra.mxu0 %v65_v30  ;;  %212 = vmatpush.msra.mxu2 %v99_v36  ;;  %v154_v57 = vld [vmem:[#allocation5 + $0x2f8] sm:$0xff]  ;;  %v111_v59 = vld [vmem:[#allocation5 + $0x1a0] sm:$0xff]  ;;  %v137_v60 = vld [vmem:[#allocation5 + $0x270] sm:$0xff] }
  0x21   :  { %194 = vmatpush.msra.mxu1 %v81_v31  ;;  %232 = vmatpush.msra.mxu3 %v115_v41  ;;  %v94_v58 = vld [vmem:[#allocation5 + $0x118] sm:$0xff]  ;;  %v153_v61 = vld [vmem:[#allocation5 + $0x2f0] sm:$0xff]  ;;  %v136_v0 = vld [vmem:[#allocation5 + $0x268] sm:$0xff] }
  0x22   :  { %175 = vmatpush.msra.mxu0 %v64_v34  ;;  %213 = vmatpush.msra.mxu2 %v98_v40  ;;  %v93_v62 = vld [vmem:[#allocation5 + $0x110] sm:$0xff]  ;;  %v110_v63 = vld [vmem:[#allocation5 + $0x198] sm:$0xff]  ;;  %v152_v1 = vld [vmem:[#allocation5 + $0x2e8] sm:$0xff] }
  0x23   :  { %195 = vmatpush.msra.mxu1 %v80_v35  ;;  %233 = vmatpush.msra.mxu3 %v114_v45  ;;  %v135_v2 = vld [vmem:[#allocation5 + $0x260] sm:$0xff]  ;;  %v92_v3 = vld [vmem:[#allocation5 + $0x108] sm:$0xff]  ;;  %v109_v4 = vld [vmem:[#allocation5 + $0x190] sm:$0xff] }
  0x24   :  { %176 = vmatpush.msra.mxu0 %v63_v38  ;;  %214 = vmatpush.msra.mxu2 %v97_v44  ;;  %v151_v5 = vld [vmem:[#allocation5 + $0x2e0] sm:$0xff]  ;;  %v108_v7 = vld [vmem:[#allocation5 + $0x188] sm:$0xff]  ;;  %v134_v8 = vld [vmem:[#allocation5 + $0x258] sm:$0xff] }
  0x25   :  { %196 = vmatpush.msra.mxu1 %v79_v39  ;;  %234 = vmatpush.msra.mxu3 %v113_v49  ;;  %v91_v6 = vld [vmem:[#allocation5 + $0x100] sm:$0xff]  ;;  %v150_v9 = vld [vmem:[#allocation5 + $0x2d8] sm:$0xff]  ;;  %v133_v12 = vld [vmem:[#allocation5 + $0x250] sm:$0xff] }
  0x26   :  { %177 = vmatpush.msra.mxu0 %v62_v42  ;;  %215 = vmatpush.msra.mxu2 %v96_v48  ;;  %v54_v10 = vld [vmem:[#allocation3 + $0x10] sm:$0xff]  ;;  %v107_v11 = vld [vmem:[#allocation5 + $0x180] sm:$0xff]  ;;  %v149_v13 = vld [vmem:[#allocation5 + $0x2d0] sm:$0xff] }
  0x27   :  { %197 = vmatpush.msra.mxu1 %v78_v43  ;;  %235 = vmatpush.msra.mxu3 %v112_v53  ;;  %v156_v14 = vld [vmem:[#allocation5 + $0x308] sm:$0xff]  ;;  %v55_v18 = vld [vmem:[#allocation3 + $0x18] sm:$0xff]  ;;  %v53_v19 = vld [vmem:[#allocation3 + $0x8] sm:$0xff] }
  0x28   :  { %178 = vmatpush.msra.mxu0 %v61_v46  ;;  %216 = vmatpush.msra.mxu2 %v95_v52  ;;  %v52_v15 = vld [vmem:[#allocation3] sm:$0xff]  ;;  %v131_v20 = vld [vmem:[#allocation5 + $0x240] sm:$0xff]  ;;  %v130_v23 = vld [vmem:[#allocation5 + $0x238] sm:$0xff] }
  0x29   :  { %198 = vmatpush.msra.mxu1 %v77_v47  ;;  %236 = vmatpush.msra.mxu3 %v111_v59  ;;  %v132_v16 = vld [vmem:[#allocation5 + $0x248] sm:$0xff]  ;;  %v147_v21 = vld [vmem:[#allocation5 + $0x2c0] sm:$0xff]  ;;  %v146_v24 = vld [vmem:[#allocation5 + $0x2b8] sm:$0xff] }
  0x2a   :  { %179 = vmatpush.msra.mxu0 %v60_v50  ;;  %217 = vmatpush.msra.mxu2 %v94_v58  ;;  %v148_v17 = vld [vmem:[#allocation5 + $0x2c8] sm:$0xff]  ;;  %v155_v22 = vld [vmem:[#allocation5 + $0x300] sm:$0xff]  ;;  %v58_v25 = vld [vmem:[#allocation3 + $0x30] sm:$0xff] }
  0x2b   :  { %199 = vmatpush.msra.mxu1 %v76_v51  ;;  %237 = vmatpush.msra.mxu3 %v110_v63  ;;  %v129_v26 = vld [vmem:[#allocation5 + $0x230] sm:$0xff]  ;;  %v128_v28 = vld [vmem:[#allocation5 + $0x228] sm:$0xff]  ;;  %v127_v30 = vld [vmem:[#allocation5 + $0x220] sm:$0xff] }
  0x2c   :  { %180 = vmatpush.msra.mxu0 %v59_v54  ;;  %218 = vmatpush.msra.mxu2 %v93_v62  ;;  %v145_v27 = vld [vmem:[#allocation5 + $0x2b0] sm:$0xff]  ;;  %v144_v29 = vld [vmem:[#allocation5 + $0x2a8] sm:$0xff]  ;;  %v143_v31 = vld [vmem:[#allocation5 + $0x2a0] sm:$0xff] }
  0x2d   :  { %200 = vmatpush.msra.mxu1 %v75_v55  ;;  %238 = vmatpush.msra.mxu3 %v109_v4  ;;  %v126_v32 = vld [vmem:[#allocation5 + $0x218] sm:$0xff]  ;;  %v125_v34 = vld [vmem:[#allocation5 + $0x210] sm:$0xff]  ;;  %v124_v36 = vld [vmem:[#allocation5 + $0x208] sm:$0xff] }
  0x2e   :  { %245 = vmatpush.msrb.mxu0 %v138_v56  ;;  %219 = vmatpush.msra.mxu2 %v92_v3  ;;  %v142_v33 = vld [vmem:[#allocation5 + $0x298] sm:$0xff]  ;;  %v141_v35 = vld [vmem:[#allocation5 + $0x290] sm:$0xff]  ;;  %v140_v37 = vld [vmem:[#allocation5 + $0x288] sm:$0xff] }
  0x2f   :  { %265 = vmatpush.msrb.mxu1 %v154_v57  ;;  %239 = vmatpush.msra.mxu3 %v108_v7  ;;  %v123_v38 = vld [vmem:[#allocation5 + $0x200] sm:$0xff]  ;;  %v56_v40 = vld [vmem:[#allocation3 + $0x20] sm:$0xff]  ;;  %v57_v41 = vld [vmem:[#allocation3 + $0x28] sm:$0xff] }
  0x30   :  { %246 = vmatpush.msrb.mxu0 %v137_v60  ;;  %220 = vmatpush.msra.mxu2 %v91_v6  ;;  %v139_v39 = vld [vmem:[#allocation5 + $0x280] sm:$0xff] }
  0x31   :  { %266 = vmatpush.msrb.mxu1 %v153_v61  ;;  %221 = vmatmul.f32.vlgmr.msra.gmra.mxu2 %v54_v10  ;;  %v341_v42 = vld [vmem:[%s454_s2] ss:$0 sm:$0xff] }
  0x32   :  { %247 = vmatpush.msrb.mxu0 %v136_v0  ;;  %240 = vmatpush.msra.mxu3 %v107_v11  ;;  %v342_v58 = vld [vmem:[%s455_s3] ss:$0 sm:$0xff] }
  0x33   :  { %267 = vmatpush.msrb.mxu1 %v152_v1  ;;  %299 = vmatpush.msrb.mxu2 %v156_v14  ;;  %v343_v61 = vld [vmem:[#allocation2] ss:$0 sm:$0xff] }
  0x34   :  { %248 = vmatpush.msrb.mxu0 %v135_v2  ;;  %241 = vmatmul.f32.vlgmr.msra.gmra.mxu3 %v55_v18 }
  0x35   :  { %268 = vmatpush.msrb.mxu1 %v151_v5  ;;  %181 = vmatmul.f32.vlgmr.msra.gmra.mxu0 %v52_v15 }
  0x36   :  { %249 = vmatpush.msrb.mxu0 %v134_v8  ;;  %201 = vmatmul.f32.vlgmr.msra.gmra.mxu1 %v53_v19 }
  0x37   :  { %269 = vmatpush.msrb.mxu1 %v150_v9  ;;  %300 = vmatpush.msrb.mxu2 %v155_v22 }
  0x38   :  { %250 = vmatpush.msrb.mxu0 %v133_v12 }
  0x39   :  { %270 = vmatpush.msrb.mxu1 %v149_v13  ;;  %336 = vmatmul.msk.f32.vlgmr.msrb.gmra.mxu2 %vm161_vm0, %v58_v25 }
  0x3a   :  { %251 = vmatpush.msrb.mxu0 %v132_v16 }
  0x3b   :  { %271 = vmatpush.msrb.mxu1 %v148_v17 }
  0x3c   :  { %252 = vmatpush.msrb.mxu0 %v131_v20 }
  0x3d   :  { %272 = vmatpush.msrb.mxu1 %v147_v21 }
  0x3e   :  { %253 = vmatpush.msrb.mxu0 %v130_v23 }
  0x3f   :  { %273 = vmatpush.msrb.mxu1 %v146_v24 }
  0x40   :  { %254 = vmatpush.msrb.mxu0 %v129_v26 }
  0x41   :  { %274 = vmatpush.msrb.mxu1 %v145_v27 }
  0x42   :  { %255 = vmatpush.msrb.mxu0 %v128_v28 }
  0x43   :  { %275 = vmatpush.msrb.mxu1 %v144_v29 }
  0x44   :  { %256 = vmatpush.msrb.mxu0 %v127_v30 }
  0x45   :  { %276 = vmatpush.msrb.mxu1 %v143_v31 }
  0x46   :  { %257 = vmatpush.msrb.mxu0 %v126_v32 }
  0x47   :  { %277 = vmatpush.msrb.mxu1 %v142_v33 }
  0x48   :  { %258 = vmatpush.msrb.mxu0 %v125_v34 }
  0x49   :  { %278 = vmatpush.msrb.mxu1 %v141_v35 }
  0x4a   :  { %259 = vmatpush.msrb.mxu0 %v124_v36 }
  0x4b   :  { %279 = vmatpush.msrb.mxu1 %v140_v37 }
  0x4c   :  { %260 = vmatpush.msrb.mxu0 %v123_v38 }
  0x4d   :  { %280 = vmatpush.msrb.mxu1 %v139_v39  ;;  %261 = vmatmul.f32.vlgmr.msrb.gmra.mxu0 %v56_v40 }
  0x4e   :  { %281 = vmatmul.f32.vlgmr.msrb.gmra.mxu1 %v57_v41 }
  0xb2   :  { %v182_v43 = vpop.f32.mrf.mxu0 }
  0xb3   :  { %v183_v44 = vadd.f32 %v341_v42, %v182_v43  ;;  %v202_v45 = vpop.f32.mrf.mxu1 }
  0xb4   :  { %v222_v47 = vpop.f32.mrf.mxu2 }
  0xb5   :  { %v203_v46 = vadd.f32 %v202_v45, %v183_v44 }
  0xb7   :  { %v223_v48 = vadd.f32 %v222_v47, %v203_v46  ;;  %v242_v49 = vpop.f32.mrf.mxu3 }
  0xb9   :  { %v243_v50 = vadd.f32 %v242_v49, %v223_v48 }
  0xbc   :  { %v302_v54 = vpop.f32.mrf.mxu2 }
  0xca   :  { %v262_v51 = vpop.f32.mrf.mxu0 }
  0xcb   :  { %v282_v52 = vpop.f32.mrf.mxu1  ;;  %v263_v53 = vadd.f32 %v262_v51, %v243_v50 }
  0xcd   :  { %v283_v55 = vadd.f32 %v282_v52, %v263_v53 }
  0xcf   :  { %v303_v56 = vadd.f32 %v302_v54, %v283_v55 }
  0xd1   :  { %v305_v57 = vmul.f32 0.1, %v303_v56 }
  0xd3   :  { %v306_v59 = vmax.f32 %v303_v56, %v305_v57 }
  0xd5   :  { %v311_v60 = vmul.f32 %v342_v58, %v306_v59 }
  0xd7   :  { %312 = vadd.xlane.f32.xlu0 %v311_v60 }
 0x14a   :  { %v313_v62 = vpop.xlane.xlu0 %312 }
 0x14b   :  { %v318_v63 = vadd.f32 %v343_v61, %v313_v62 }
 0x14d   :  { %v319_v0 = vand.u32 2147483647, %v318_v63  ;;  %vm323_vm1 = vcmp.ge.f32.partialorder %v318_v63, 0.0 }
 0x14f   :  { %v320_v1 = vsub.f32 0.0, %v319_v0 }
 0x151   :  { %v321_v2 = vmul.f32 1.442695, %v320_v1 }
 0x153   :  { %344 = vpow2.f32 %v321_v2 }
 0x159   :  { %v345_v3 = vpop.eup %344 }
 0x15a   :  { %v325_v4 = vadd.f32 1.0, %v345_v3  ;;  %v324_v6 = vsel %vm323_vm1, 1.0, %v345_v3 }
 0x15c   :  { %346 = vrcp.f32 %v325_v4 }
 0x162   :  { %v347_v5 = vpop.eup %346 }
 0x163   :  { %v327_v7 = vmul.f32 %v347_v5, %v324_v6 }
 0x165   :  { %329 = vst.msk [vmem:[%s457_s5] sm:$0xff] %vm328_vm2, %v327_v7 }
 0x166   :  { %334 = vsyncpa [#allocation4], 1 }
 0x167   :  { %335 = vsyncpa [#allocation6], 1 }

</bundles_post_ra>
